<compile_context>
chip_gen: v6e
topology: v6e:2x2x1
jax: 0.10.0
libtpu: 0.0.40
codegen_flags: <defaults>
</compile_context>

<pallas_src>
import functools

import jax
import jax.numpy as jnp
from jax import lax
from jax.experimental import pallas as pl
from jax.experimental.pallas import tpu as pltpu


_LANE = 128
_TARGET_TILE_ROWS = 2048                 # ~1 MiB f32 per (rows x 128) block
_VMEM_LIMIT_BYTES = 32 * 1024 * 1024     # safe on v5e/v6e/v7x; tiles << this


def _round_up(n, m):
    return ((n + m - 1) // m) * m


# ----------------------------- kernels -------------------------------------


def _add_kernel(x_ref, pe_ref, o_ref):
    # eval-mode dropout is identity: out = x + pe (pe block may hold a few
    # extra padded rows -> static slice to the x block's row count).
    rows = x_ref.shape[1]
    o_ref[...] = (x_ref[...] + pe_ref[:, :rows, :]).astype(o_ref.dtype)


def _add_dropout_kernel(seed_ref, x_ref, pe_ref, o_ref, *,
                        keep_threshold31, inv_keep, batch_stride, row_stride):
    # training-mode: out = dropout(x + pe) with inverted-dropout scaling.
    tb, rows, lanes = x_ref.shape
    y = x_ref[...] + pe_ref[:, :rows, :]

    # Unique global element id from (batch, row, lane) + grid position.
    gb0 = pl.program_id(1) * tb          # global batch offset of this block
    gr0 = pl.program_id(0) * rows        # global row offset of this block
    b_idx = (gb0 + lax.broadcasted_iota(jnp.int32, (tb, rows, lanes), 0)
             ).astype(jnp.uint32)
    r_idx = (gr0 + lax.broadcasted_iota(jnp.int32, (tb, rows, lanes), 1)
             ).astype(jnp.uint32)
    l_idx = lax.broadcasted_iota(jnp.int32, (tb, rows, lanes), 2
                                 ).astype(jnp.uint32)
    uid = (b_idx * jnp.uint32(batch_stride)
           + r_idx * jnp.uint32(row_stride)
           + l_idx)

    # Counter-based hash (murmur3-style finalizer) of (uid, seed).
    seed_u = (seed_ref[0] & jnp.int32(0x7FFFFFFF)).astype(jnp.uint32)
    h = uid * jnp.uint32(0x9E3779B1) + seed_u * jnp.uint32(0x85EBCA77) + jnp.uint32(1)
    h = h ^ (h >> 16)
    h = h * jnp.uint32(0x7FEB352D)
    h = h ^ (h >> 15)
    h = h * jnp.uint32(0x846CA68B)
    h = h ^ (h >> 16)

    # keep iff top 31 hash bits < round(keep_prob * 2^31): signed compare on
    # non-negative values (bias <= 2^-31 in keep probability, negligible).
    keep = (h >> 1).astype(jnp.int32) < jnp.int32(keep_threshold31)
    o_ref[...] = jnp.where(keep, y * inv_keep, 0.0).astype(o_ref.dtype)


# --------------------------- parameter setup --------------------------------


def make_positional_encoding_table(n_hid, max_len=1000, dtype=jnp.float32):
    """Builds pe of shape (1, max_len, n_hid), matching the torch __init__."""
    position = jnp.arange(0.0, max_len, dtype=jnp.float32)[:, None]
    # NOTE: reproduces the original precedence: (10000 ** arange) / n_hid
    div_term = 1.0 / (
        10000.0 ** jnp.arange(0.0, n_hid, 2.0, dtype=jnp.float32) / n_hid
    )
    pe = jnp.zeros((max_len, n_hid), dtype=jnp.float32)
    pe = pe.at[:, 0::2].set(jnp.sin(position * div_term))
    pe = pe.at[:, 1::2].set(jnp.cos(position * div_term))
    pe = pe[None, :, :] / jnp.sqrt(jnp.float32(n_hid))
    return pe.astype(dtype)


# ------------------------------ wrapper -------------------------------------


def positional_encoding(x, pe, *, dropout=0.1, training=False, seed=0):
    """x: (B, S, H).  pe: (1, max_len, H) from make_positional_encoding_table."""
    B, S, H = x.shape
    assert pe.ndim == 3 and pe.shape[0] == 1 and pe.shape[2] == H
    max_len = pe.shape[1]
    assert max_len >= S

    lane_dense = (S * H) % _LANE == 0

    if lane_dense:
        # View (S, H) as (R, 128): elementwise op is layout-agnostic as long
        # as x and pe are flattened identically (row-major).
        R = (S * H) // _LANE
        pe_table_dense = (max_len * H) % _LANE == 0
        PE_R = (max_len * H) // _LANE if pe_table_dense else 0
        zero_copy_pe = pe_table_dense and pe.dtype == x.dtype

        x_in = x.reshape(B, R, _LANE)
        batch_stride, row_stride = R * _LANE, _LANE

        if R >= _TARGET_TILE_ROWS:
            # Large per-batch data: tile rows, one batch per block.
            tile_b = 1
            tile_r = _TARGET_TILE_ROWS
            grid_r = pl.cdiv(R, tile_r)
            if B == 1 and grid_r == 1 and tile_r >= 16:
                # keep >=2 parallel blocks so v7x's second TC is not idle
                tile_r = _round_up(pl.cdiv(R, 2), 8)
                grid_r = pl.cdiv(R, tile_r)
            grid_b = B
            if zero_copy_pe:
                # Zero-copy reshape of the full table; BlockSpec windows it.
                pe_in = pe.reshape(1, PE_R, _LANE)
            else:
                pe_in = pe[:, :S, :].astype(x.dtype).reshape(1, R, _LANE)
            pe_rows = tile_r
            pe_index = lambda r, b, *_: (0, r, 0)
        else:
            # Small per-batch data: merge batches into one block so each grid
            # step moves ~1 MiB instead of a few KiB.
            tile_r = R
            grid_r = 1
            tile_b = max(1, min(B, _TARGET_TILE_ROWS // R))
            grid_b = pl.cdiv(B, tile_b)
            if grid_b == 1 and B >= 2:
                tile_b = pl.cdiv(B, 2)          # >=2 parallel blocks (v7x)
                grid_b = pl.cdiv(B, tile_b)
            if zero_copy_pe and (R % 8 == 0 or R == PE_R):
                pe_in = pe.reshape(1, PE_R, _LANE)
                pe_rows = R
            elif zero_copy_pe and _round_up(R, 8) <= PE_R:
                # Legal block (multiple of 8 rows, in-bounds of the table);
                # kernel statically slices back down to R rows.
                pe_in = pe.reshape(1, PE_R, _LANE)
                pe_rows = _round_up(R, 8)
            else:
                pe_in = pe[:, :S, :].astype(x.dtype).reshape(1, R, _LANE)
                pe_rows = R
            pe_index = lambda r, b, *_: (0, 0, 0)

        x_block = (tile_b, tile_r, _LANE)
        pe_block = (1, pe_rows, _LANE)
        x_index = lambda r, b, *_: (b, r, 0)
        out_shape = jax.ShapeDtypeStruct((B, R, _LANE), x.dtype)
    else:
        # Lane-sparse fallback (S*H % 128 != 0): full (S, H) tiles, but packed
        # tile_b batches per block to amortize per-step grid overhead.
        # TODO(synk): split an H>=128 prefix into the lane-dense fast path.
        x_in = x
        pe_in = pe[:, :S, :].astype(x.dtype)
        tile_r = S
        tile_b = max(1, min(B, max(1, (_TARGET_TILE_ROWS * _LANE) // (S * H))))
        grid_r = 1
        grid_b = pl.cdiv(B, tile_b)
        if grid_b == 1 and B >= 2:
            tile_b = pl.cdiv(B, 2)
            grid_b = pl.cdiv(B, tile_b)
        batch_stride, row_stride = S * H, H
        x_block = (tile_b, S, H)
        pe_block = (1, S, H)
        x_index = lambda r, b, *_: (b, 0, 0)
        pe_index = lambda r, b, *_: (0, 0, 0)
        out_shape = jax.ShapeDtypeStruct((B, S, H), x.dtype)

    grid = (grid_r, grid_b)
    cparams = pltpu.CompilerParams(
        dimension_semantics=("parallel", "parallel"),
        vmem_limit_bytes=_VMEM_LIMIT_BYTES,
    )

    keep_prob = 1.0 - float(dropout)
    use_dropout = training and keep_prob < 1.0

    if not use_dropout:
        out = pl.pallas_call(
            _add_kernel,
            out_shape=out_shape,
            grid=grid,
            in_specs=[
                pl.BlockSpec(x_block, x_index),
                pl.BlockSpec(pe_block, pe_index),
            ],
            out_specs=pl.BlockSpec(x_block, x_index),
            compiler_params=cparams,
        )(x_in, pe_in)
        return out.reshape(B, S, H)

    keep_threshold31 = min(int(round(keep_prob * 2 ** 31)), 2 ** 31 - 1)
    inv_keep = 1.0 / keep_prob if keep_prob > 0.0 else 0.0
    kernel = functools.partial(
        _add_dropout_kernel,
        keep_threshold31=keep_threshold31,
        inv_keep=inv_keep,
        batch_stride=batch_stride % (2 ** 32),
        row_stride=row_stride % (2 ** 32),
    )
    seed_arr = jnp.asarray([seed], dtype=jnp.int32)
    out = pl.pallas_call(
        kernel,
        out_shape=out_shape,
        grid_spec=pltpu.PrefetchScalarGridSpec(
            num_scalar_prefetch=1,
            grid=grid,
            in_specs=[
                pl.BlockSpec(x_block, x_index),
                pl.BlockSpec(pe_block, pe_index),
            ],
            out_specs=pl.BlockSpec(x_block, x_index),
        ),
        compiler_params=cparams,
    )(seed_arr, x_in, pe_in)
    return out.reshape(B, S, H)


# -------------------------------- main --------------------------------------

if __name__ == "__main__":
    B, S, H = 2, 8, 32
    max_len = 1000

    key = jax.random.PRNGKey(0)
    x = jax.random.normal(key, (B, S, H), dtype=jnp.float32)

    pe = make_positional_encoding_table(H, max_len=max_len, dtype=x.dtype)
    ref = x + pe[:, :S, :]

    # --- eval mode: dropout is identity -> deterministic check vs reference.
    out_eval = jax.block_until_ready(
        positional_encoding(x, pe, dropout=0.1, training=False)
    )
    assert out_eval.shape == (B, S, H)
    assert jnp.allclose(out_eval, ref, atol=1e-6, rtol=1e-6)

    # --- training mode: every surviving element equals (x + pe) / keep_prob.
    dropout_p = 0.1
    out_train = jax.block_until_ready(
        positional_encoding(x, pe, dropout=dropout_p, training=True, seed=123)
    )
    kept = ref / (1.0 - dropout_p)
    ok = jnp.logical_or(
        out_train == 0.0,
        jnp.isclose(out_train, kept, atol=1e-5, rtol=1e-5),
    )
    assert out_train.shape == (B, S, H)
    assert bool(jnp.all(ok))

    print("KERNEL_OK")
</pallas_src>

<mosaic_0001>
module attributes {stable_mosaic.version = 11 : i64} {
  func.func @_add_kernel(%arg0: i32, %arg1: i32, %arg2: memref<1x2x128xf32, #tpu.memory_space<vmem>>, %arg3: memref<1x8x128xf32, #tpu.memory_space<vmem>>, %arg4: memref<1x2x128xf32, #tpu.memory_space<vmem>>) attributes {dimension_semantics = [#tpu.dimension_semantics<parallel>, #tpu.dimension_semantics<parallel>], iteration_bounds = array<i64: 1, 2>, scalar_prefetch = 0 : i64, scratch_operands = 0 : i64, tpu.core_type = #tpu.core_type<tc>, window_params = [{transform_indices = @transform_0, window_bounds = array<i64: 1, 2, 128>}, {transform_indices = @transform_1, window_bounds = array<i64: 1, 8, 128>}, {transform_indices = @transform_2, window_bounds = array<i64: 1, 2, 128>}]} {
    %c0 = arith.constant 0 : index
    %c0_0 = arith.constant 0 : index
    %c0_1 = arith.constant 0 : index
    %0 = vector.load %arg2[%c0, %c0_0, %c0_1] : memref<1x2x128xf32, #tpu.memory_space<vmem>>, vector<1x2x128xf32>
    %c0_2 = arith.constant 0 : index
    %c0_3 = arith.constant 0 : index
    %c0_4 = arith.constant 0 : index
    %1 = vector.load %arg3[%c0_2, %c0_3, %c0_4] : memref<1x8x128xf32, #tpu.memory_space<vmem>>, vector<1x2x128xf32>
    %2 = arith.addf %0, %1 : vector<1x2x128xf32>
    %c0_5 = arith.constant 0 : index
    %c0_6 = arith.constant 0 : index
    %c0_7 = arith.constant 0 : index
    %3 = vector.load %arg4[%c0_5, %c0_6, %c0_7] : memref<1x2x128xf32, #tpu.memory_space<vmem>>, vector<1x2x128xf32>
    tpu.vector_store %arg4[%c0_5, %c0_6, %c0_7], %2 {strides = array<i32>} : memref<1x2x128xf32, #tpu.memory_space<vmem>>, vector<1x2x128xf32>,
    return
  }
  func.func @transform_0(%arg0: i32, %arg1: i32) -> (i32, i32, i32) {
    %c0_i32 = arith.constant 0 : i32
    %c0_i32_0 = arith.constant 0 : i32
    return %arg1, %arg0, %c0_i32 : i32, i32, i32
  }
  func.func @transform_1(%arg0: i32, %arg1: i32) -> (i32, i32, i32) {
    %c0_i32 = arith.constant 0 : i32
    %c0_i32_0 = arith.constant 0 : i32
    %c0_i32_1 = arith.constant 0 : i32
    %c0_i32_2 = arith.constant 0 : i32
    return %c0_i32, %c0_i32_0, %c0_i32_1 : i32, i32, i32
  }
  func.func @transform_2(%arg0: i32, %arg1: i32) -> (i32, i32, i32) {
    %c0_i32 = arith.constant 0 : i32
    %c0_i32_0 = arith.constant 0 : i32
    return %arg1, %arg0, %c0_i32 : i32, i32, i32
  }
}

</mosaic_0001>

<bundles_post_ra>
// kernel: tpu_custom_call.1
= control target key start
LH: loop header
LB: loop body
LE: loop exit
PB: predicated region body
PF: predicated region fallthrough
CT: control target
= control target key end

     0   :  { %7 = vsyncpa [#allocation3], 0  ;;  %s516_s0 = inlined_call_operand.vmem [shape: f32[2,2,128], index: 0, kind: input, shape index: {}]   ;;  %s517_s1 = inlined_call_operand.vmem [shape: f32[1,250,128], index: 1, kind: input, shape index: {}]   ;;  %s518_s2 = inlined_call_operand.hbm [shape: f32[2,2,128], index: 2, kind: output, shape index: {}]  }
   0x1   :  { %9 = vsyncpa [#allocation3 + $0x1], 0  ;;  %s414_s9 = smov 0   ;;  %s416_s10 = smov 0  }
   0x2   :  { %s418_s11 = smov 0   ;;  %s420_s12 = smov 0  }
   0x3   :  { %s422_s13 = smov 0   ;;  %s424_s14 = smov 0  }
   0x4 LB: > { %s254_s15 = sadd.s32 4294967295, %s396_s14   ;;  %s255_s16 = sadd.s32 4294967294, %s396_s14   ;;  %s396_s14 = sphi %s424_s14, %s15_s14   ;;  %s392_s13 = sphi %s422_s13, %s525_s13   ;;  %s388_s12 = sphi %s420_s12, %s524_s12   ;;  %s384_s11 = sphi %s418_s11, %s523_s11   ;;  %s380_s10 = sphi %s416_s10, %s522_s10   ;;  %s376_s9 = sphi %s414_s9, %s521_s9  }
   0x5   : > { %s24_s17 = sadd.s32 1, %s392_s13  ;;  %s85_s18 = sadd.s32 1, %s384_s11 }
   0x6   : > { %p25_p0 = scmp.ge.s32.totalorder %s24_s17, 2  ;;  %p95_p1 = scmp.ne.s32.totalorder %s384_s11, %s380_s10 }
   0x7   : > { %p96_p2 = scmp.eq.s32.totalorder %s254_s15, 1  ;;  %p101_p3 = scmp.ne.s32.totalorder %s380_s10, %s376_s9 }
   0x8   : > { %s527_s17 = smov (%p25_p0, %s24_s17), 0  ;;  %p102_p5 = scmp.eq.s32.totalorder %s255_s16, 1 }
   0x9   : > { %p454_p4 = por %p96_p2, %p95_p1  ;;  %s80_s20 = ssub.s32 %s392_s13, %s527_s17 }
   0xa   : > { %p258_p6 = scmp.ge.s32.totalorder %s396_s14, 1  ;;  %p83_p7 = scmp.eq.s32.totalorder %s80_s20, 0 }
   0xb   : > { %p461_p8 = por %p102_p5, %p101_p3  ;;  %p133_p9 = scmp.lt.s32.totalorder %s396_s14, 3 }
   0xc   : > { %s467_s22 = scalar_select %p83_p7, %s384_s11, %s85_s18  }
   0xd   : > { %p134_p10 = pnand %p258_p6, %p133_p9 }
   0xe   : > { %s154_s23 = sand.u32 (!%p134_p10), 1, %s380_s10   ;;  %p157_p11 = scmp.lt.s32.totalorder (!%p134_p10), %s388_s12, 1 }
   0xf   : > { %137 = sbr.rel (%p134_p10) target bundleno = 42 (0x2a), region = 28  ;;  %s259_s24 = sshll.u32 (!%p134_p10), %s154_s23, 1 }
  0x10   : > { %s262_s26 = sshll.u32 (!%p134_p10), %s388_s12, 5  ;;  %s156_s30 = scalar_lea.vmem (!%p134_p10), [#allocation2], %s259_s24 }
  0x11   : > { %s183_s3 = sshll.u32 (!%p134_p10), %s156_s30, 4  ;;  %s181_s15 = scalar_lea.hbm (!%p134_p10), %s518_s2, %s262_s26  ;;  %s184_s3 = int_to_ptr.vmem [resolvable:$true] %s183_s3 }
  0x12   : > { %s320_s16 = scalar_lea.vmem (!%p134_p10), %s184_s3, 32  ;;  %s398_s18 = smov (!%p134_p10), [#allocation2]  }
  0x13   : > { %p321_p12 = scmp.ne.s32.totalorder (!%p134_p10), %s184_s3, %s320_s16  ;;  %s324_s20 = sshll.u32 (!%p134_p10), %s398_s18, 4  ;;  %s325_s20 = int_to_ptr.vmem [resolvable:$false] %s324_s20 }
  0x14   : > { %s158_s25 = scalar_select %p157_p11, %s388_s12, 1  ;;  %v165_v0 = vld [vmem:[%s517_s1] sm:$0x3] }
  0x15   : > { %s169_s12 = scalar_lea.sflag [#allocation3], %s154_s23  ;;  %p322_p13 = pnand %p321_p12, %p454_p4 }
  0x16   : > { %s260_s27 = sshll.u32 %s158_s25, 1  ;;  %s326_s24 = scalar_lea.vmem %s325_s20, 64 }
  0x17   : > { %s163_s6 = scalar_lea.vmem %s516_s0, %s260_s27  ;;  %p323_p0 = pneg %p322_p13 }
  0x18   : > { %v164_v1 = vld [vmem:[%s163_s6] sm:$0x3]  ;;  %p327_p1 = scmp.lt.s32.totalorder %s184_s3, %s325_s20  ;;  %p328_p2 = scmp.lt.s32.totalorder %s326_s24, %s320_s16 }
  0x19   : > { %v166_v2 = vadd.f32 %v165_v0, %v164_v1 }
  0x1a   : > { %p329_p3 = por %p328_p2, %p327_p1 }
  0x1b   : > { %167 = vst [vmem:[%s156_s30] sm:$0x3] %v166_v2 }
  0x1c   : > { %p330_p5 = pnand %p329_p3, %p323_p0 }
  0x1e   : > { %333 = shalt.err (!%p330_p5)
}
  0x1f   : > { %s334_s25 = scalar_lea.hbm %s181_s15, 32  ;;  %s338_s27 = scalar_lea.hbm %s518_s2, 64 }
  0x20   : > { %p335_p6 = scmp.ne.s32.totalorder %s181_s15, %s334_s25  ;;  %p339_p10 = scmp.lt.s32.totalorder %s181_s15, %s518_s2 }
  0x21   : > { %p340_p11 = scmp.lt.s32.totalorder %s338_s27, %s334_s25 }
  0x22   : > { %p336_p7 = pnand %p335_p6, %p454_p4 }
  0x23   : > { %p341_p12 = por %p340_p11, %p339_p10 }
  0x24   : > { %p337_p9 = pneg %p336_p7 }
  0x26   : > { %p342_p13 = pnand %p341_p12, %p337_p9 }
  0x28   : > { %345 = shalt.err (!%p342_p13)
}
  0x29   : > { %265 = dma.vmem_to_hbm [thread:$0]  (%p454_p4), %s184_s3, 32, %s181_s15, %s169_s12  }
  0x2a PF: > { %p271_p0 = scmp.ge.s32.totalorder %s396_s14, 2  ;;  %s195_s30 = sand.u32 1, %s376_s9  }
  0x2b   : > { %s196_s4 = scalar_lea.sflag [#allocation3], %s195_s30 }
  0x2c   : > { %p268_p1 = pnand %p271_p0, %p461_p8 }
  0x2e   : > { %p269_p2 = pneg %p268_p1 }
  0x30   : > { %371 = dma.done.wait (%p269_p2), %s196_s4, 32  }
  0x31   : > { %373 = vsyncadd (%p269_p2), %s196_s4, 4294967264  ;;  %s15_s14 = sadd.s32 1, %s396_s14   ;;  %s521_s9 = smov %s380_s10 }
  0x32   : > { %p12_p3 = scmp.ge.s32.totalorder %s15_s14, 4   ;;  %s522_s10 = smov %s384_s11 }
  0x33   : > { %s523_s11 = smov %s467_s22  ;;  %s524_s12 = smov %s392_s13 }
  0x34   : > { %s525_s13 = smov %s527_s17  ;;  %14 = sbr.rel (!%p12_p3) target bundleno = 4 (0x4), region = 63 }
  0x39   :  { %201 = vsyncpa [#allocation3], 1 }
  0x3a   :  { %203 = vsyncpa [#allocation3 + $0x1], 1 }

</bundles_post_ra>
